<compile_context>
chip_gen: v6e
topology: v6e:2x2x1
jax: 0.10.0
libtpu: 0.0.40
codegen_flags: <defaults>
</compile_context>

<pallas_src>
import numpy as np

import jax
import jax.numpy as jnp
from jax.experimental import pallas as pl
from jax.experimental.pallas import tpu as pltpu

# ---- config (mirrors cnn_model.__init__ at small synthetic sizes) -----------
BATCH = 2
SEQ = 8                       # sequence length coming out of BERT
HIDDEN = 32                   # config.hidden_size (emb_size)
FILTER_NUM = 4                # config.filter_num
FILTER_SIZES = (2, 3, 4)      # config.filter_sizes
NUM_CLASSES = 2
TOTAL_FEATS = len(FILTER_SIZES) * FILTER_NUM    # 12
K_MAX = max(FILTER_SIZES)                       # 4 distinct shifts
ROWS = BATCH * SEQ                              # 16

LANE = 128                    # per-shift block width (one vreg of lanes)
SLAB_COLS = K_MAX * LANE      # 512 -- fused conv weight slab width
CONST_ROWS = 24               # >= ROWS + NUM_CLASSES + 1, padded to 8-multiple
NEG = -1e30                   # masked-bias value for invalid window rows


# ----------------------------- Pallas kernel ---------------------------------
def _cnn_kernel(feat_ref,     # [ROWS, HIDDEN]       flattened (batch*seq, hidden)
                wslab_ref,    # [HIDDEN, SLAB_COLS]  fused conv weight slab
                const_ref,    # [CONST_ROWS, LANE]   masked bias + fc0 w/b slab
                out_ref):     # [BATCH, NUM_CLASSES]
    # One fused MXU matmul for every conv branch and every within-filter shift.
    # Lane c = k*LANE + i*FILTER_NUM + f holds W_i[k][:, f] (zero elsewhere).
    r = jnp.dot(feat_ref[...], wslab_ref[...],
                preferred_element_type=jnp.float32)             # [ROWS, 512]

    # Shift-sum on VPU: scores[p, j] = sum_k r[p + k, k*LANE + j].
    # Each k-block is a whole 128-lane slab, so the slice is lane-aligned and
    # the roll is a pure sublane rotation (XLU); wrapped rows only land on
    # invalid window positions, which are killed by the masked bias below.
    scores = r[:, 0:LANE]
    for k in range(1, K_MAX):
        scores = scores + pltpu.roll(r[:, k * LANE:(k + 1) * LANE],
                                     ROWS - k, axis=0)

    # Masked bias + ReLU: valid rows/lanes get the conv bias, invalid/wrapped
    # rows get -1e30 so they clamp to 0 and cannot win the max-pool.
    scores = jnp.maximum(scores + const_ref[0:ROWS, :], 0.0)    # [ROWS, 128]

    # Max-pool over the sequence axis via aligned per-batch sublane slices
    # (no in-kernel reshape -> no relayout copy).
    pooled = jnp.concatenate(
        [jnp.max(scores[b * SEQ:(b + 1) * SEQ, :], axis=0, keepdims=True)
         for b in range(BATCH)], axis=0)                        # [BATCH, 128]

    # fc0 on the VPU: broadcast-multiply + lane reduce (no second MXU dot).
    # fc0 weight rows live zero-padded in lanes 0..TOTAL_FEATS-1 of the slab.
    fcb = const_ref[ROWS + NUM_CLASSES:ROWS + NUM_CLASSES + 1,
                    0:NUM_CLASSES]                              # [1, 2]
    out_cols = []
    for c in range(NUM_CLASSES):
        wc = const_ref[ROWS + c:ROWS + c + 1, :]                # [1, 128]
        out_cols.append(jnp.sum(pooled * wc, axis=-1, keepdims=True))  # [B, 1]
    out_ref[...] = jnp.concatenate(out_cols, axis=1) + fcb      # [BATCH, 2]


# ------------------------------ wrapper ---------------------------------------
@jax.jit
def cnn_forward(features, packed):
    feat2d = features.reshape(ROWS, HIDDEN)
    return pl.pallas_call(
        _cnn_kernel,
        out_shape=jax.ShapeDtypeStruct((BATCH, NUM_CLASSES), jnp.float32),
        grid=(1,),
        in_specs=[
            pl.BlockSpec((ROWS, HIDDEN), lambda i: (0, 0)),
            pl.BlockSpec((HIDDEN, SLAB_COLS), lambda i: (0, 0)),
            pl.BlockSpec((CONST_ROWS, LANE), lambda i: (0, 0)),
        ],
        out_specs=pl.BlockSpec((BATCH, NUM_CLASSES), lambda i: (0, 0)),
        compiler_params=pltpu.CompilerParams(
            dimension_semantics=("arbitrary",)),
    )(feat2d, packed['w_slab'], packed['const'])


# ------------------- pack original-layout params for the kernel ---------------
def pack_params(params):
    """Build the 128-lane-aligned conv weight slab and the fused constant slab
    (masked conv bias + fc0 weights/bias) consumed by the kernel."""
    # Conv weight slab: shift-major blocks of width LANE; inside each block the
    # first TOTAL_FEATS lanes hold branch-major conv weights, rest are zeros.
    w_slab = np.zeros((HIDDEN, SLAB_COLS), np.float32)
    for k in range(K_MAX):
        for i, fsz in enumerate(FILTER_SIZES):
            if k < fsz:
                col = k * LANE + i * FILTER_NUM
                w_slab[:, col:col + FILTER_NUM] = np.asarray(
                    params[f'conv{fsz}_w'][k])

    # Constant slab layout:
    #   rows 0..ROWS-1                : masked conv bias (NEG on invalid rows)
    #   rows ROWS..ROWS+NUM_CLASSES-1 : fc0 weight rows (lanes 0..11, rest 0)
    #   row  ROWS+NUM_CLASSES         : fc0 bias (lanes 0..NUM_CLASSES-1)
    const = np.zeros((CONST_ROWS, LANE), np.float32)
    bias_masked = np.full((ROWS, LANE), NEG, np.float32)
    for i, fsz in enumerate(FILTER_SIZES):
        L = SEQ - fsz + 1                       # number of valid windows
        bvals = np.asarray(params[f'conv{fsz}_b'])[0]
        for b in range(BATCH):
            bias_masked[b * SEQ:b * SEQ + L,
                        i * FILTER_NUM:(i + 1) * FILTER_NUM] = bvals
    const[0:ROWS, :] = bias_masked
    const[ROWS:ROWS + NUM_CLASSES, 0:TOTAL_FEATS] = np.asarray(params['fc_w']).T
    const[ROWS + NUM_CLASSES, 0:NUM_CLASSES] = np.asarray(params['fc_b'])[0]

    return {'w_slab': jnp.asarray(w_slab), 'const': jnp.asarray(const)}


# ----------------------- deterministic parameter init -------------------------
def init_params(key):
    params = {}
    keys = jax.random.split(key, 2 * len(FILTER_SIZES) + 2)
    for i, fsz in enumerate(FILTER_SIZES):
        # PyTorch Conv2d weight is [F, 1, fsz, H]; stored here as [fsz, H, F].
        params[f'conv{fsz}_w'] = (
            0.1 * jax.random.normal(keys[2 * i], (fsz, HIDDEN, FILTER_NUM),
                                    jnp.float32))
        params[f'conv{fsz}_b'] = (
            0.1 * jax.random.normal(keys[2 * i + 1], (1, FILTER_NUM),
                                    jnp.float32))
    # PyTorch Linear weight is [2, 3F]; stored here as [3F, 2].
    params['fc_w'] = 0.1 * jax.random.normal(keys[-2],
                                             (TOTAL_FEATS, NUM_CLASSES),
                                             jnp.float32)
    params['fc_b'] = 0.1 * jax.random.normal(keys[-1], (1, NUM_CLASSES),
                                             jnp.float32)
    return params


# ---------------------------- pure-JAX reference ------------------------------
def reference(features, params):
    outs = []
    for fsz in FILTER_SIZES:
        w = params[f'conv{fsz}_w']
        b = params[f'conv{fsz}_b']
        L = SEQ - fsz + 1
        s = jnp.zeros((BATCH, L, FILTER_NUM), jnp.float32)
        for k in range(fsz):
            s = s + jnp.einsum('blh,hf->blf', features[:, k:k + L, :], w[k])
        s = jax.nn.relu(s + b[None, :, :])
        outs.append(jnp.max(s, axis=1))
    x = jnp.concatenate(outs, axis=1)
    return x @ params['fc_w'] + params['fc_b']


if __name__ == "__main__":
    key = jax.random.PRNGKey(0)
    k_feat, k_params = jax.random.split(key)

    # `features` stands in for the RobertaModel output (modelcard_outputs[0]).
    features = jax.random.normal(k_feat, (BATCH, SEQ, HIDDEN), jnp.float32)
    params = init_params(k_params)
    packed = pack_params(params)

    out = cnn_forward(features, packed)
    out = jax.block_until_ready(out)

    ref = reference(features, params)
    assert out.shape == (BATCH, NUM_CLASSES)
    assert jnp.allclose(out, ref, atol=1e-4, rtol=1e-4), (out, ref)

    print("KERNEL_OK")
</pallas_src>

<mosaic_0001>
module attributes {stable_mosaic.version = 11 : i64} {
  func.func @_cnn_kernel(%arg0: i32, %arg1: memref<16x32xf32, #tpu.memory_space<vmem>>, %arg2: memref<32x512xf32, #tpu.memory_space<vmem>>, %arg3: memref<24x128xf32, #tpu.memory_space<vmem>>, %arg4: memref<2x2xf32, #tpu.memory_space<vmem>>) attributes {dimension_semantics = [#tpu.dimension_semantics<arbitrary>], iteration_bounds = array<i64: 1>, scalar_prefetch = 0 : i64, scratch_operands = 0 : i64, tpu.core_type = #tpu.core_type<tc>, window_params = [{pipeline_mode = #tpu.pipeline_mode<synchronous>, transform_indices = @transform_0, window_bounds = array<i64: 16, 32>}, {pipeline_mode = #tpu.pipeline_mode<synchronous>, transform_indices = @transform_1, window_bounds = array<i64: 32, 512>}, {pipeline_mode = #tpu.pipeline_mode<synchronous>, transform_indices = @transform_2, window_bounds = array<i64: 24, 128>}, {pipeline_mode = #tpu.pipeline_mode<synchronous>, transform_indices = @transform_3, window_bounds = array<i64: 2, 2>}]} {
    %c0 = arith.constant 0 : index
    %c0_0 = arith.constant 0 : index
    %0 = vector.load %arg1[%c0, %c0_0] : memref<16x32xf32, #tpu.memory_space<vmem>>, vector<16x32xf32>
    %c0_1 = arith.constant 0 : index
    %c0_2 = arith.constant 0 : index
    %1 = vector.load %arg2[%c0_1, %c0_2] : memref<32x512xf32, #tpu.memory_space<vmem>>, vector<32x512xf32>
    %cst = arith.constant dense<0.000000e+00> : vector<16x512xf32>
    %2 = tpu.matmul %0, %1, %cst {dimension_numbers = #tpu.dot_dimension_numbers<[1], [0], [0], [1], [0, 0, 1, 1], [], []>} : vector<16x32xf32>, vector<32x512xf32>, vector<16x512xf32> -> vector<16x512xf32>
    %3 = vector.extract_strided_slice %2 {offsets = [0, 0], sizes = [16, 128], strides = [1, 1]} : vector<16x512xf32> to vector<16x128xf32>
    %4 = vector.extract_strided_slice %2 {offsets = [0, 128], sizes = [16, 128], strides = [1, 1]} : vector<16x512xf32> to vector<16x128xf32>
    %c15_i32 = arith.constant 15 : i32
    %5 = tpu.dynamic_rotate %4 by %c15_i32 dim 0 : vector<16x128xf32>, i32 -> vector<16x128xf32>
    %6 = arith.addf %3, %5 : vector<16x128xf32>
    %7 = vector.extract_strided_slice %2 {offsets = [0, 256], sizes = [16, 128], strides = [1, 1]} : vector<16x512xf32> to vector<16x128xf32>
    %c14_i32 = arith.constant 14 : i32
    %8 = tpu.dynamic_rotate %7 by %c14_i32 dim 0 : vector<16x128xf32>, i32 -> vector<16x128xf32>
    %9 = arith.addf %6, %8 : vector<16x128xf32>
    %10 = vector.extract_strided_slice %2 {offsets = [0, 384], sizes = [16, 128], strides = [1, 1]} : vector<16x512xf32> to vector<16x128xf32>
    %c13_i32 = arith.constant 13 : i32
    %11 = tpu.dynamic_rotate %10 by %c13_i32 dim 0 : vector<16x128xf32>, i32 -> vector<16x128xf32>
    %12 = arith.addf %9, %11 : vector<16x128xf32>
    %c0_3 = arith.constant 0 : index
    %c0_4 = arith.constant 0 : index
    %13 = vector.load %arg3[%c0_3, %c0_4] : memref<24x128xf32, #tpu.memory_space<vmem>>, vector<16x128xf32>
    %14 = arith.addf %12, %13 : vector<16x128xf32>
    %cst_5 = arith.constant 0.000000e+00 : f32
    %15 = vector.broadcast %cst_5 : f32 to vector<16x128xf32>
    %16 = arith.maximumf %14, %15 : vector<16x128xf32>
    %17 = vector.extract_strided_slice %16 {offsets = [0, 0], sizes = [8, 128], strides = [1, 1]} : vector<16x128xf32> to vector<8x128xf32>
    %cst_6 = arith.constant dense<0xFF800000> : vector<128xf32>
    %18 = vector.multi_reduction <maximumf>, %17, %cst_6 [0] : vector<8x128xf32> to vector<128xf32>
    %19 = vector.shape_cast %18 : vector<128xf32> to vector<1x128xf32>
    %20 = vector.extract_strided_slice %16 {offsets = [8, 0], sizes = [8, 128], strides = [1, 1]} : vector<16x128xf32> to vector<8x128xf32>
    %cst_7 = arith.constant dense<0xFF800000> : vector<128xf32>
    %21 = vector.multi_reduction <maximumf>, %20, %cst_7 [0] : vector<8x128xf32> to vector<128xf32>
    %22 = vector.shape_cast %21 : vector<128xf32> to vector<1x128xf32>
    %23 = tpu.concatenate %19, %22 in 0 : vector<1x128xf32>, vector<1x128xf32> -> vector<2x128xf32>
    %c18 = arith.constant 18 : index
    %c0_8 = arith.constant 0 : index
    %24 = vector.load %arg3[%c18, %c0_8] : memref<24x128xf32, #tpu.memory_space<vmem>>, vector<1x2xf32>
    %c16 = arith.constant 16 : index
    %c0_9 = arith.constant 0 : index
    %25 = vector.load %arg3[%c16, %c0_9] : memref<24x128xf32, #tpu.memory_space<vmem>>, vector<1x128xf32>
    %26 = vector.broadcast %25 : vector<1x128xf32> to vector<2x128xf32>
    %27 = arith.mulf %23, %26 : vector<2x128xf32>
    %cst_10 = arith.constant dense<0.000000e+00> : vector<2xf32>
    %28 = vector.multi_reduction <add>, %27, %cst_10 [1] : vector<2x128xf32> to vector<2xf32>
    %29 = vector.shape_cast %28 : vector<2xf32> to vector<2x1xf32>
    %c17 = arith.constant 17 : index
    %c0_11 = arith.constant 0 : index
    %30 = vector.load %arg3[%c17, %c0_11] : memref<24x128xf32, #tpu.memory_space<vmem>>, vector<1x128xf32>
    %31 = vector.broadcast %30 : vector<1x128xf32> to vector<2x128xf32>
    %32 = arith.mulf %23, %31 : vector<2x128xf32>
    %cst_12 = arith.constant dense<0.000000e+00> : vector<2xf32>
    %33 = vector.multi_reduction <add>, %32, %cst_12 [1] : vector<2x128xf32> to vector<2xf32>
    %34 = vector.shape_cast %33 : vector<2xf32> to vector<2x1xf32>
    %35 = tpu.concatenate %29, %34 in 1 : vector<2x1xf32>, vector<2x1xf32> -> vector<2x2xf32>
    %36 = vector.broadcast %24 : vector<1x2xf32> to vector<2x2xf32>
    %37 = arith.addf %35, %36 : vector<2x2xf32>
    %c0_13 = arith.constant 0 : index
    %c0_14 = arith.constant 0 : index
    %38 = vector.load %arg4[%c0_13, %c0_14] : memref<2x2xf32, #tpu.memory_space<vmem>>, vector<2x2xf32>
    tpu.vector_store %arg4[%c0_13, %c0_14], %37 {strides = array<i32>} : memref<2x2xf32, #tpu.memory_space<vmem>>, vector<2x2xf32>,
    return
  }
  func.func @transform_0(%arg0: i32) -> (i32, i32) {
    %c0_i32 = arith.constant 0 : i32
    %c0_i32_0 = arith.constant 0 : i32
    %c0_i32_1 = arith.constant 0 : i32
    return %c0_i32, %c0_i32_0 : i32, i32
  }
  func.func @transform_1(%arg0: i32) -> (i32, i32) {
    %c0_i32 = arith.constant 0 : i32
    %c0_i32_0 = arith.constant 0 : i32
    %c0_i32_1 = arith.constant 0 : i32
    return %c0_i32, %c0_i32_0 : i32, i32
  }
  func.func @transform_2(%arg0: i32) -> (i32, i32) {
    %c0_i32 = arith.constant 0 : i32
    %c0_i32_0 = arith.constant 0 : i32
    %c0_i32_1 = arith.constant 0 : i32
    return %c0_i32, %c0_i32_0 : i32, i32
  }
  func.func @transform_3(%arg0: i32) -> (i32, i32) {
    %c0_i32 = arith.constant 0 : i32
    %c0_i32_0 = arith.constant 0 : i32
    %c0_i32_1 = arith.constant 0 : i32
    return %c0_i32, %c0_i32_0 : i32, i32
  }
}

</mosaic_0001>

<bundles_post_ra>
// kernel: cnn_forward.1
= control target key start
LH: loop header
LB: loop body
LE: loop exit
PB: predicated region body
PF: predicated region fallthrough
CT: control target
= control target key end

     0   :  { %8 = vsyncpa [#allocation3], 0  ;;  %s466_s0 = inlined_call_operand.hbm [shape: f32[16,32], index: 0, kind: input, shape index: {}]   ;;  %s467_s1 = inlined_call_operand.hbm [shape: f32[32,512], index: 1, kind: input, shape index: {}]   ;;  %s468_s2 = inlined_call_operand.hbm [shape: f32[24,128], index: 2, kind: input, shape index: {}]   ;;  %s469_s3 = inlined_call_operand.hbm [shape: f32[2,2], index: 3, kind: output, shape index: {}]  }
   0x1   :  { %9 = vsyncpa [#allocation6], 0 }
   0x2   :  { %10 = vsyncpa [#allocation4], 0  ;;  %s425_s12 = smov [#allocation5]  }
   0x3   :  { %s28_s13 = sshll.u32 %s425_s12, 4  ;;  %s29_s13 = int_to_ptr.vmem [resolvable:$true] %s28_s13 }
   0x4   :  { %s347_s14 = scalar_lea.vmem %s29_s13, 2048  ;;  %p352_p1 = scmp.lt.s32.totalorder %s29_s13, %s29_s13 }
   0x5   :  { %p348_p0 = scmp.ne.s32.totalorder %s29_s13, %s347_s14  ;;  %p353_p2 = scmp.lt.s32.totalorder %s347_s14, %s347_s14 }
   0x7   :  { %p354_p3 = por %p353_p2, %p352_p1 }
   0x9   :  { %p355_p4 = pnand %p354_p3, %p348_p0 }
   0xb   :  { %358 = shalt.err (!%p355_p4)
}
   0xc   :  { %s426_s15 = smov 512   ;;  %s427_s16 = smov 32  }
   0xd   :  { %34 = dma.hbm_to_vmem [thread:$0]  %s467_s1, 2048, %s29_s13, [#allocation6], %s426_s15, %s426_s15, %s427_s16  }
   0xe   :  { %s428_s19 = smov [#allocation2]  }
   0xf   :  { %s16_s20 = sshll.u32 %s428_s19, 4  ;;  %s17_s20 = int_to_ptr.vmem [resolvable:$true] %s16_s20 }
  0x10   :  { %s367_s21 = scalar_lea.vmem %s17_s20, 256  ;;  %p372_p6 = scmp.lt.s32.totalorder %s17_s20, %s17_s20 }
  0x11   :  { %p368_p5 = scmp.ne.s32.totalorder %s17_s20, %s367_s21  ;;  %p373_p7 = scmp.lt.s32.totalorder %s367_s21, %s367_s21 }
  0x13   :  { %p374_p8 = por %p373_p7, %p372_p6 }
  0x15   :  { %p375_p9 = pnand %p374_p8, %p368_p5 }
  0x17   :  { %378 = shalt.err (!%p375_p9)
}
  0x18   :  { %s429_s22 = smov 128   ;;  %s430_s23 = smov 8  }
  0x19   :  { %22 = dma.hbm_to_vmem [thread:$0]  %s466_s0, 256, %s17_s20, [#allocation3], %s429_s22, %s429_s22, %s430_s23  }
  0x1a   :  { %s431_s26 = smov [#allocation7]  }
  0x1b   :  { %s40_s27 = sshll.u32 %s431_s26, 4  ;;  %s41_s27 = int_to_ptr.vmem [resolvable:$true] %s40_s27 }
  0x1c   :  { %s387_s1 = scalar_lea.vmem %s41_s27, 384  ;;  %p392_p11 = scmp.lt.s32.totalorder %s41_s27, %s41_s27 }
  0x1d   :  { %p388_p10 = scmp.ne.s32.totalorder %s41_s27, %s387_s1  ;;  %p393_p12 = scmp.lt.s32.totalorder %s387_s1, %s387_s1 }
  0x1f   :  { %p394_p13 = por %p393_p12, %p392_p11 }
  0x21   :  { %p395_p0 = pnand %p394_p13, %p388_p10 }
  0x23   :  { %398 = shalt.err (!%p395_p0)
}
  0x24   :  { %46 = dma.hbm_to_vmem [thread:$0]  %s468_s2, 384, %s41_s27, [#allocation6], %s429_s22, %s429_s22, %s430_s23  }
  0x25   :  { %419 = dma.done.wait [#allocation3], 256  }
  0x26   :  { %420 = vsyncadd [#allocation3], 4294967040 }
  0x27   :  { %421 = dma.done.wait [#allocation6], 2432  }
  0x28   :  { %422 = vsyncadd [#allocation6], 4294964864  ;;  %v432_v0 = vmov 0.0   ;;  %v71_v1 = vld [vmem:[#allocation5 + $0x68] sm:$0xff]  ;;  %v73_v2 = vld [vmem:[#allocation5 + $0x78] sm:$0xff]  ;;  %vm74_vm0 = vcmask 261120   ;;  %v237_v21 = vlaneseq }
  0x29   :  { %145 = vmatprep.mubr.f32.mxu0 %v432_v0  ;;  %222 = vmatprep.mubr.f32.mxu1 %v432_v0  ;;  %v70_v3 = vld [vmem:[#allocation5 + $0x60] sm:$0xff]  ;;  %v72_v4 = vld [vmem:[#allocation5 + $0x70] sm:$0xff]  ;;  %v67_v5 = vld [vmem:[#allocation5 + $0x48] sm:$0xff]  ;;  %vm276_vm4 = vcmask 1040384   ;;  %vm285_vm5 = vcmask 1041408   ;;  %vm298_vm6 = vcmask 7168  }
  0x2a   :  { %105 = vmatprep.subr.mxu0 %v71_v1  ;;  %182 = vmatprep.subr.mxu1 %v73_v2  ;;  %v69_v6 = vld [vmem:[#allocation5 + $0x58] sm:$0xff]  ;;  %v66_v7 = vld [vmem:[#allocation5 + $0x40] sm:$0xff]  ;;  %v68_v8 = vld [vmem:[#allocation5 + $0x50] sm:$0xff]  ;;  %v238_v26 = vshrl.u32 %v237_v21, 7  ;;  %s433_s0 = smov [#allocation8]   ;;  %vm305_vm7 = vcmask 9216  }
  0x2b   :  { %106 = vmatpush1.msra.mxu0 %v70_v3  ;;  %183 = vmatpush1.msra.mxu1 %v72_v4  ;;  %v63_v9 = vld [vmem:[#allocation5 + $0x28] sm:$0xff]  ;;  %v65_v10 = vld [vmem:[#allocation5 + $0x38] sm:$0xff]  ;;  %v62_v11 = vld [vmem:[#allocation5 + $0x20] sm:$0xff]  ;;  %s313_s2 = sshll.u32 %s433_s0, 4  ;;  %s314_s2 = int_to_ptr.vmem [resolvable:$true] %s313_s2 }
  0x2c   :  { %107 = vmatprep.subr.mxu0 %v67_v5  ;;  %184 = vmatprep.subr.mxu1 %v69_v6  ;;  %v64_v12 = vld [vmem:[#allocation5 + $0x30] sm:$0xff]  ;;  %v59_v13 = vld [vmem:[#allocation5 + $0x8] sm:$0xff]  ;;  %v61_v14 = vld [vmem:[#allocation5 + $0x18] sm:$0xff]  ;;  %vm239_vm1 = vcmp.lt.s32.totalorder %v238_v26, 7  ;;  %vm246_vm2 = vcmp.lt.s32.totalorder %v238_v26, 6  ;;  %vm253_vm3 = vcmp.lt.s32.totalorder %v238_v26, 5  ;;  %p404_p2 = scmp.lt.s32.totalorder %s314_s2, %s314_s2 }
  0x2d   :  { %108 = vmatpush1.msra.mxu0 %v66_v7  ;;  %185 = vmatpush1.msra.mxu1 %v68_v8  ;;  %v58_v15 = vld [vmem:[#allocation5] sm:$0xff]  ;;  %v60_v16 = vld [vmem:[#allocation5 + $0x10] sm:$0xff]  ;;  %v57_v18 = vld [vmem:[#allocation2 + $0x8] sm:$0xff]  ;;  %s399_s30 = scalar_lea.vmem %s314_s2, 32 }
  0x2e   :  { %109 = vmatprep.subr.mxu0 %v63_v9  ;;  %186 = vmatprep.subr.mxu1 %v65_v10  ;;  %v56_v17 = vld [vmem:[#allocation2] sm:$0xff]  ;;  %v258_v45 = vld [vmem:[#allocation7] sm:$0xff]  ;;  %v259_v46 = vld [vmem:[#allocation7 + $0x8] sm:$0xff]  ;;  %p400_p1 = scmp.ne.s32.totalorder %s314_s2, %s399_s30  ;;  %p405_p3 = scmp.lt.s32.totalorder %s399_s30, %s399_s30 }
  0x2f   :  { %110 = vmatpush1.msra.mxu0 %v62_v11  ;;  %187 = vmatpush1.msra.mxu1 %v64_v12  ;;  %v327_v1 = vld [vmem:[#allocation7 + $0x10] ss:$0 sm:$0xff]  ;;  %v328_v3 = vld [vmem:[#allocation7 + $0x11] ss:$0 sm:$0xff]  ;;  %v329_v9 = vld [vmem:[#allocation7 + $0x12] ss:$0 sm:$0xff] }
  0x30   :  { %111 = vmatprep.subr.mxu0 %v59_v13  ;;  %188 = vmatprep.subr.mxu1 %v61_v14  ;;  %p406_p4 = por %p405_p3, %p404_p2 }
  0x31   :  { %112 = vmatpush1.msra.mxu0 %v58_v15  ;;  %189 = vmatpush1.msra.mxu1 %v60_v16 }
  0x32   :  { %323 = vmatmul.mubr.msk.f32.vlgmr.msra.gmra.mxu0 %vm74_vm0, %v56_v17  ;;  %325 = vmatmul.mubr.msk.f32.vlgmr.msra.gmra.mxu1 %vm74_vm0, %v56_v17  ;;  %p407_p5 = pnand %p406_p4, %p400_p1 }
  0x33   :  { %151 = vmatprep.mubr.f32.mxu0 %v432_v0  ;;  %228 = vmatprep.mubr.f32.mxu1 %v432_v0 }
  0x36   :  { %324 = vmatmul.mubr.msk.f32.gmra.mxu0 %vm74_vm0, %v57_v18  ;;  %326 = vmatmul.mubr.msk.f32.gmra.mxu1 %vm74_vm0, %v57_v18 }
  0xf2   :  { %v147_v19 = vpop.f32.mrf.mxu0  ;;  %v224_v20 = vpop.f32.mrf.mxu1 }
  0xf3   :  { %v244_v29 = vrot.slane %v224_v20, 2 }
  0xf4   :  { %v149_v22 = vpop.f32.mrf.mxu0  ;;  %v226_v23 = vpop.f32.mrf.mxu1 }
  0xf5   :  { %v235_v30 = vrot.slane %v149_v22, 1  ;;  %v251_v38 = vrot.slane %v226_v23, 3 }
  0xf6   :  { %v153_v24 = vpop.f32.mrf.mxu0  ;;  %v230_v25 = vpop.f32.mrf.mxu1 }
  0xf7   :  { %v245_v31 = vrot.slane %v230_v25, 2 }
  0xf8   :  { %v155_v27 = vpop.f32.mrf.mxu0  ;;  %v232_v28 = vpop.f32.mrf.mxu1 }
  0xf9   :  { %v236_v32 = vrot.slane %v155_v27, 1  ;;  %v252_v35 = vrot.slane %v232_v28, 3  ;;  %v247_v39 = vsel %vm246_vm2, %v244_v29, %v245_v31  ;;  %v248_v40 = vsel %vm246_vm2, %v245_v31, %v244_v29 }
  0xfb   :  { %v240_v33 = vsel %vm239_vm1, %v235_v30, %v236_v32  ;;  %v241_v34 = vsel %vm239_vm1, %v236_v32, %v235_v30  ;;  %v254_v43 = vsel %vm253_vm3, %v251_v38, %v252_v35  ;;  %v255_v44 = vsel %vm253_vm3, %v252_v35, %v251_v38 }
  0xfc   :  { %v242_v36 = vadd.f32 %v240_v33, %v147_v19  ;;  %v243_v37 = vadd.f32 %v241_v34, %v153_v24 }
  0xfe   :  { %v249_v41 = vadd.f32 %v247_v39, %v242_v36  ;;  %v250_v42 = vadd.f32 %v248_v40, %v243_v37 }
 0x100   :  { %v256_v47 = vadd.f32 %v254_v43, %v249_v41  ;;  %v257_v48 = vadd.f32 %v255_v44, %v250_v42 }
 0x102   :  { %v260_v49 = vadd.f32 %v258_v45, %v256_v47  ;;  %v261_v50 = vadd.f32 %v259_v46, %v257_v48 }
 0x104   :  { %v262_v51 = vmax.f32 %v260_v49, 0.0  ;;  %v263_v52 = vmax.f32 %v261_v50, 0.0 }
 0x106   :  { %v264_v53 = vrot.slane %v262_v51, 4  ;;  %v270_v54 = vrot.slane %v263_v52, 4 }
 0x108   :  { %v265_v55 = vmax.f32 %v262_v51, %v264_v53  ;;  %v271_v56 = vmax.f32 %v263_v52, %v270_v54 }
 0x10a   :  { %v266_v57 = vrot.slane %v265_v55, 2  ;;  %v272_v58 = vrot.slane %v271_v56, 2 }
 0x10c   :  { %v267_v59 = vmax.f32 %v265_v55, %v266_v57  ;;  %v273_v60 = vmax.f32 %v271_v56, %v272_v58 }
 0x10e   :  { %v268_v61 = vrot.slane %v267_v59, 1  ;;  %v274_v62 = vrot.slane %v273_v60, 1 }
 0x110   :  { %v269_v63 = vmax.f32 %v267_v59, %v268_v61  ;;  %v275_v0 = vmax.f32 %v273_v60, %v274_v62 }
 0x112   :  { %v277_v2 = vsel %vm276_vm4, %v269_v63, %v275_v0 }
 0x113   :  { %v284_v4 = vmul.f32 %v327_v1, %v277_v2  ;;  %v294_v6 = vmul.f32 %v328_v3, %v277_v2 }
 0x115   :  { %v286_v5 = vsel %vm285_vm5, %v284_v4, 0.0  ;;  %v295_v7 = vsel %vm285_vm5, %v294_v6, 0.0 }
 0x116   :  { %287 = vadd.xlane.f32.xlu0 %v286_v5 }
 0x11a   :  { %296 = vadd.xlane.f32.xlu0 %v295_v7 }
 0x19f   :  { %v288_v8 = vpop.xlane.xlu0 %287 }
 0x1a3   :  { %v297_v10 = vpop.xlane.xlu0 %296 }
 0x1a4   :  { %v299_v11 = vsel %vm298_vm6, %v288_v8, %v297_v10 }
 0x1a5   :  { %v304_v12 = vadd.f32 %v329_v9, %v299_v11 }
 0x1a7   :  { %306 = vst.msk [vmem:[#allocation8] sm:$0x3] %vm305_vm7, %v304_v12 }
 0x1a8   :  { %410 = shalt.err (!%p407_p5)
}
 0x1a9   :  { %316 = dma.vmem_to_hbm [thread:$0]  %s314_s2, 32, %s469_s3, [#allocation4]  }
 0x1aa   :  { %423 = dma.done.wait [#allocation4], 32  }
 0x1ab   :  { %424 = vsyncadd [#allocation4], 4294967264 }
 0x1ac   :  { %320 = vsyncpa [#allocation3], 1 }
 0x1ad   :  { %321 = vsyncpa [#allocation6], 1 }
 0x1ae   :  { %322 = vsyncpa [#allocation4], 1 }

</bundles_post_ra>
